<compile_context>
chip_gen: v5e
topology: v5e:2x2
jax: 0.10.0
libtpu: 0.0.40
codegen_flags: <defaults>
</compile_context>

<pallas_src>
import math
import jax
import jax.numpy as jnp
from jax.experimental import pallas as pl
from jax.experimental.pallas import tpu as pltpu


# ----------------------------- kernel 1: scores ------------------------------
def score_kernel(emb_ref, scorer_ref, inv_norm_ref, out_ref):
    # emb_ref: (TM, F) VMEM tile; scorer_ref: (F, 1) VMEM; inv_norm_ref: (1,) SMEM.
    s = jnp.dot(emb_ref[...], scorer_ref[...], preferred_element_type=jnp.float32)
    out_ref[...] = s * inv_norm_ref[0]          # multiply by hoisted 1/||scorer||


def _row_tile(n, f):
    # ~16 MiB of double-buffered f32 rows for the embedding stream: large
    # enough (512-1024 rows for typical F) to sit near the HBM roofline on
    # v5e/v6e, yet comfortably inside v7x's 64 MiB VMEM.
    budget = 16 * 1024 * 1024
    tm = max(8, min(1024, budget // (2 * f * 4)))
    tm = (tm // 8) * 8
    return n if tm >= n else tm


def compute_scores(node_embs, scorer):
    n, f = node_embs.shape
    tm = _row_tile(n, f)
    # Hoisted once outside the grid: 1/||scorer|| as an SMEM scalar.
    inv_norm = (1.0 / jnp.sqrt(jnp.sum(scorer * scorer))).reshape(1).astype(jnp.float32)
    # TODO(synk): for very large F also tile the contraction dim (grid
    # (N//TM, F//TK) + f32 scratch accumulator with pl.when init/finalize).
    return pl.pallas_call(
        score_kernel,
        out_shape=jax.ShapeDtypeStruct((n, 1), jnp.float32),
        grid=(pl.cdiv(n, tm),),
        in_specs=[
            pl.BlockSpec((tm, f), lambda i: (i, 0)),              # embedding row tile
            pl.BlockSpec((f, 1), lambda i: (0, 0)),               # scorer (resident)
            pl.BlockSpec(memory_space=pltpu.MemorySpace.SMEM),    # 1/||scorer||
        ],
        out_specs=pl.BlockSpec((tm, 1), lambda i: (i, 0)),
        compiler_params=pltpu.CompilerParams(
            dimension_semantics=("parallel",),   # megacore split on v7x, no-op elsewhere
            vmem_limit_bytes=48 * 1024 * 1024,   # explicit scoped limit (< v7x 64 MiB)
        ),
    )(node_embs, scorer, inv_norm)


# ------------------ kernel 2: scalar-prefetch gather + scale ------------------
def gather_scale_kernel(idx_ref, emb_row_ref, gate_ref, out_ref):
    # idx_ref: (k,) int32 scalar-prefetch, consumed by the index_map only.
    # emb_row_ref: (1, F) VMEM — node_embs[idx[i]], DMA'd directly from HBM.
    # gate_ref: (k,) f32 SMEM — tanh(top_k values).
    del idx_ref
    i = pl.program_id(0)
    out_ref[...] = emb_row_ref[...] * gate_ref[i]


def gather_and_scale(topk_idx, gate, node_embs):
    k = topk_idx.shape[0]
    _, f = node_embs.shape
    return pl.pallas_call(
        gather_scale_kernel,
        out_shape=jax.ShapeDtypeStruct((k, f), jnp.float32),
        grid_spec=pltpu.PrefetchScalarGridSpec(
            num_scalar_prefetch=1,               # topk_idx lands in SMEM pre-grid
            grid=(k,),
            in_specs=[
                # Gather: DMA only the selected row node_embs[idx[i]] (k*F*4 bytes
                # of HBM traffic total instead of staging the whole (N, F) array).
                pl.BlockSpec((1, f), lambda i, idx: (idx[i], 0)),
                pl.BlockSpec(memory_space=pltpu.MemorySpace.SMEM),   # tanh(vals)
            ],
            out_specs=pl.BlockSpec((1, f), lambda i, idx: (i, 0)),
        ),
        compiler_params=pltpu.CompilerParams(
            dimension_semantics=("arbitrary",),
        ),
    )(topk_idx, node_embs, gate)


# ------------------------------- TopK forward --------------------------------
def topk_forward(node_embs, scorer, k):
    n = node_embs.shape[0]
    assert k <= n, "k > N would require pad_with_last_val (not reproduced)"
    scores = compute_scores(node_embs, scorer)                  # (N, 1)
    # TODO(synk): top-k selection stays in plain JAX (lax.top_k); a fused
    # per-tile partial top-k inside the score kernel would only matter for
    # very large N.
    vals, topk_idx = jax.lax.top_k(scores.reshape(-1), k)
    # vals == scores[idx], so reuse them instead of re-gathering scores;
    # the `vals > -inf` / pad path is a no-op for finite inputs.
    gate = jnp.tanh(vals).astype(jnp.float32)                   # (k,)
    out_kf = gather_and_scale(topk_idx.astype(jnp.int32), gate, node_embs)
    return out_kf.T                                             # (F, k) == out.t()


# ---------------------------------- driver ------------------------------------
if __name__ == "__main__":
    N_NODES, FEATS, K = 16, 32, 8

    key = jax.random.PRNGKey(0)
    k_emb, k_scorer = jax.random.split(key)

    node_embs = jax.random.normal(k_emb, (N_NODES, FEATS), dtype=jnp.float32)

    # nn.Parameter(torch.Tensor(feats, 1)).uniform_(-stdv, stdv), stdv = 1/sqrt(feats)
    stdv = 1.0 / math.sqrt(FEATS)
    scorer = jax.random.uniform(
        k_scorer, (FEATS, 1), minval=-stdv, maxval=stdv, dtype=jnp.float32
    )

    out = topk_forward(node_embs, scorer, K)
    out = jax.block_until_ready(out)

    # pure-JAX reference check
    ref_scores = (node_embs @ scorer) / jnp.linalg.norm(scorer)
    _, ref_idx = jax.lax.top_k(ref_scores.reshape(-1), K)
    ref_out = (node_embs[ref_idx] * jnp.tanh(ref_scores[ref_idx].reshape(-1, 1))).T

    assert out.shape == (FEATS, K)
    assert jnp.allclose(out, ref_out, rtol=1e-5, atol=1e-5)

    print("KERNEL_OK")
</pallas_src>

<mosaic_0001>
module attributes {stable_mosaic.version = 11 : i64} {
  func.func @score_kernel(%arg0: i32, %arg1: memref<16x32xf32, #tpu.memory_space<vmem>>, %arg2: memref<32x1xf32, #tpu.memory_space<vmem>>, %arg3: memref<1xf32, #tpu.memory_space<smem>>, %arg4: memref<16x1xf32, #tpu.memory_space<vmem>>) attributes {dimension_semantics = [#tpu.dimension_semantics<parallel>], iteration_bounds = array<i64: 1>, scalar_prefetch = 0 : i64, scratch_operands = 0 : i64, tpu.core_type = #tpu.core_type<tc>, window_params = [{transform_indices = @transform_0, window_bounds = array<i64: 16, 32>}, {pipeline_mode = #tpu.pipeline_mode<synchronous>, transform_indices = @transform_1, window_bounds = array<i64: 32, 1>}, {transform_indices = @transform_2, window_bounds = array<i64: 1>}, {transform_indices = @transform_3, window_bounds = array<i64: 16, 1>}]} {
    %c0 = arith.constant 0 : index
    %c0_0 = arith.constant 0 : index
    %0 = vector.load %arg1[%c0, %c0_0] : memref<16x32xf32, #tpu.memory_space<vmem>>, vector<16x32xf32>
    %c0_1 = arith.constant 0 : index
    %c0_2 = arith.constant 0 : index
    %1 = vector.load %arg2[%c0_1, %c0_2] : memref<32x1xf32, #tpu.memory_space<vmem>>, vector<32x1xf32>
    %cst = arith.constant dense<0.000000e+00> : vector<16x1xf32>
    %2 = tpu.matmul %0, %1, %cst {dimension_numbers = #tpu.dot_dimension_numbers<[1], [0], [0], [1], [0, 0, 1, 1], [], []>} : vector<16x32xf32>, vector<32x1xf32>, vector<16x1xf32> -> vector<16x1xf32>
    %c0_3 = arith.constant 0 : index
    %3 = memref.load %arg3[%c0_3] : memref<1xf32, #tpu.memory_space<smem>>
    %4 = vector.broadcast %3 : f32 to vector<16x1xf32>
    %5 = arith.mulf %2, %4 : vector<16x1xf32>
    %c0_4 = arith.constant 0 : index
    %c0_5 = arith.constant 0 : index
    %6 = vector.load %arg4[%c0_4, %c0_5] : memref<16x1xf32, #tpu.memory_space<vmem>>, vector<16x1xf32>
    tpu.vector_store %arg4[%c0_4, %c0_5], %5 {strides = array<i32>} : memref<16x1xf32, #tpu.memory_space<vmem>>, vector<16x1xf32>,
    return
  }
  func.func @transform_0(%arg0: i32) -> (i32, i32) {
    %c0_i32 = arith.constant 0 : i32
    %c0_i32_0 = arith.constant 0 : i32
    return %arg0, %c0_i32 : i32, i32
  }
  func.func @transform_1(%arg0: i32) -> (i32, i32) {
    %c0_i32 = arith.constant 0 : i32
    %c0_i32_0 = arith.constant 0 : i32
    %c0_i32_1 = arith.constant 0 : i32
    return %c0_i32, %c0_i32_0 : i32, i32
  }
  func.func @transform_2(%arg0: i32) -> i32 {
    %c0_i32 = arith.constant 0 : i32
    %c0_i32_0 = arith.constant 0 : i32
    return %c0_i32 : i32
  }
  func.func @transform_3(%arg0: i32) -> (i32, i32) {
    %c0_i32 = arith.constant 0 : i32
    %c0_i32_0 = arith.constant 0 : i32
    return %arg0, %c0_i32 : i32, i32
  }
}

</mosaic_0001>

<bundles_post_ra>
// kernel: tpu_custom_call.1
= control target key start
LH: loop header
LB: loop body
LE: loop exit
PB: predicated region body
PF: predicated region fallthrough
CT: control target
= control target key end

     0   :  { %vm21_vm0 = vcmask 261120   ;;  %vm55_vm1 = vcmask 7168   ;;  %s115_s1 = inlined_call_operand.vmem [shape: f32[32,1], index: 1, kind: input, shape index: {}]   ;;  %s116_s0 = inlined_call_operand.vmem [shape: f32[16,32], index: 0, kind: input, shape index: {}]   ;;  %s117_s2 = inlined_call_operand.<no memory space> [shape: f32[1], index: 2, kind: input, shape index: {}]   ;;  %s118_s3 = inlined_call_operand.vmem [shape: f32[16,1], index: 3, kind: output, shape index: {}]  }
   0x1   :  { %v20_v0 = vld [vmem:[%s115_s1 + $0x18] sm:$0xff]  ;;  %v19_v1 = vld [vmem:[%s115_s1 + $0x10] sm:$0xff]  ;;  %v18_v2 = vld [vmem:[%s115_s1 + $0x8] sm:$0xff]  ;;  %v52_v6 = vstv %s117_s2 }
   0x2   :  { %40 = vmatpush.msra.mxu0 %v20_v0  ;;  %64 = vmatpush.msra.mxu1 %v20_v0  ;;  %v17_v3 = vld [vmem:[%s115_s1] sm:$0xff]  ;;  %v16_v5 = vld [vmem:[%s116_s0 + $0x8] sm:$0xff] }
   0x3   :  { %v15_v4 = vld [vmem:[%s116_s0] sm:$0xff] }
   0x4   :  { %41 = vmatpush.msra.mxu0 %v19_v1  ;;  %65 = vmatpush.msra.mxu1 %v19_v1 }
   0x6   :  { %42 = vmatpush.msra.mxu0 %v18_v2  ;;  %66 = vmatpush.msra.mxu1 %v18_v2 }
   0x8   :  { %43 = vmatpush.msra.mxu0 %v17_v3  ;;  %67 = vmatpush.msra.mxu1 %v17_v3 }
   0x9   :  { %62 = vmatmul.msk.f32.vlgmr.msra.gmra.mxu0 %vm21_vm0, %v15_v4  ;;  %63 = vmatmul.msk.f32.vlgmr.msra.gmra.mxu1 %vm21_vm0, %v16_v5 }
  0x86   :  { %v45_v7 = vpop.f32.mrf.mxu0  ;;  %v48_v8 = vpop.f32.mrf.mxu1 }
  0x87   :  { %v53_v9 = vmul.f32 %v52_v6, %v45_v7  ;;  %v54_v10 = vmul.f32 %v52_v6, %v48_v8 }
  0x89   :  { %56 = vst.msk [vmem:[%s118_s3] sm:$0xff] %vm55_vm1, %v53_v9 }
  0x8a   :  { %57 = vst.msk [vmem:[%s118_s3 + $0x8] sm:$0xff] %vm55_vm1, %v54_v10 }

</bundles_post_ra>
